<compile_context>
chip_gen: v5e
topology: v5e:2x2
jax: 0.10.0
libtpu: 0.0.40
codegen_flags: <defaults>
</compile_context>

<pallas_src>
import jax
import jax.numpy as jnp
from jax.experimental import pallas as pl
from jax.experimental.pallas import tpu as pltpu

# ----------------------------- configuration --------------------------------
B = 2          # batch
C = 4          # image channels
H1 = W1 = 16   # scale-1 resolution
H2 = W2 = 32   # scale-2 resolution
PATCH1 = 8     # patch size for scale 1
PATCH2 = 16    # patch size for scale 2
HID = 32       # vision hidden size
PROJ = 16      # visual projection dim
P = (H1 // PATCH1) * (W1 // PATCH1)  # = 4 patches per image (same for both scales)
assert (H2 // PATCH2) * (W2 // PATCH2) == P

DIN1 = C * PATCH1 * PATCH1   # 256
DIN2 = C * PATCH2 * PATCH2   # 1024
DIN = DIN1 + DIN2            # 1280 (fused K for the patch embed)
HID2 = 2 * HID               # 64   (fused pooler width)
OUT = 2 * PROJ               # 32   (concatenated projection width)


# ------------------------------ Pallas kernel --------------------------------
def _fused_clip_kernel(
    x_ref,    # (B, DIN)      pooled patch features, both scales concatenated
    wp_ref,   # (DIN, HID2)   block-diag patch-embed weights
    bp_ref,   # (1, HID2)     concatenated patch-embed biases
    wq_ref,   # (HID2, HID2)  block-diag pooler-dense weights
    bq_ref,   # (1, HID2)     concatenated pooler-dense biases
    wv_ref,   # (HID2, OUT)   block-diag visual-projection weights
    out_ref,  # (B, OUT)
):
    # patch embed (mean-pool already applied in the wrapper; bias is invariant
    # under pooling because pooling weights sum to 1)
    pooled = jnp.dot(x_ref[...], wp_ref[...],
                     preferred_element_type=jnp.float32) + bp_ref[...]   # (B, HID2)
    # pooler head: dense + tanh (both branches in one GEMM via block-diag WQ)
    hid = jnp.tanh(jnp.dot(pooled, wq_ref[...],
                           preferred_element_type=jnp.float32) + bq_ref[...])
    # bias-free visual projections; block-diag WV makes the concat implicit —
    # lanes [:PROJ] are branch 1, [PROJ:] are branch 2. Stored directly.
    out_ref[...] = jnp.dot(hid, wv_ref[...], preferred_element_type=jnp.float32)


# ------------------------------- JAX wrapper ---------------------------------
def _extract_patches(x, patch):
    """NCHW image -> (B*P, C*patch*patch) patch matrix (channel-major per patch)."""
    b, c, h, w = x.shape
    hp, wp = h // patch, w // patch
    x = x.reshape(b, c, hp, patch, wp, patch)
    x = jnp.transpose(x, (0, 2, 4, 1, 3, 5))          # (B, Hp, Wp, C, ph, pw)
    return x.reshape(b * hp * wp, c * patch * patch)  # (B*P, C*ph*pw)


def _mean_pool_patches(x, patch):
    """NCHW image -> (B, C*patch*patch): mean over patches of the patch matrix."""
    b = x.shape[0]
    pm = _extract_patches(x, patch)                   # (B*P, Din)
    return pm.reshape(b, P, -1).mean(axis=1)          # (B, Din)


def pack_fused_params(params):
    """Build block-diagonal fused weights once (init-time), not per call."""
    f32 = jnp.float32
    wp = jnp.block([[params["wp1"], jnp.zeros((DIN1, HID), f32)],
                    [jnp.zeros((DIN2, HID), f32), params["wp2"]]])      # (DIN, HID2)
    wq = jnp.block([[params["wq1"], jnp.zeros((HID, HID), f32)],
                    [jnp.zeros((HID, HID), f32), params["wq2"]]])       # (HID2, HID2)
    wv = jnp.block([[params["wv1"], jnp.zeros((HID, PROJ), f32)],
                    [jnp.zeros((HID, PROJ), f32), params["wv2"]]])      # (HID2, OUT)
    bp = jnp.concatenate([params["bp1"], params["bp2"]], axis=1)        # (1, HID2)
    bq = jnp.concatenate([params["bq1"], params["bq2"]], axis=1)        # (1, HID2)
    return {"wp": wp, "bp": bp, "wq": wq, "bq": bq, "wv": wv}


def multiscale_clip_forward(pixel_values1, pixel_values2, fused):
    # mean-pool the patch matrices in the wrapper (commutes with affine embed)
    x1p = _mean_pool_patches(pixel_values1, PATCH1)   # (B, DIN1)
    x2p = _mean_pool_patches(pixel_values2, PATCH2)   # (B, DIN2)
    x = jnp.concatenate([x1p, x2p], axis=1)           # (B, DIN)

    vmem = pl.BlockSpec(memory_space=pltpu.MemorySpace.VMEM)
    args = (x, fused["wp"], fused["bp"], fused["wq"], fused["bq"], fused["wv"])
    return pl.pallas_call(
        _fused_clip_kernel,
        out_shape=jax.ShapeDtypeStruct((B, OUT), jnp.float32),
        in_specs=[vmem] * len(args),
        out_specs=vmem,
    )(*args)


# -------------------------- pure-JAX reference -------------------------------
def _reference(pixel_values1, pixel_values2, params):
    def branch(pix, patch, wp, bp, wq, bq, wv):
        x = _extract_patches(pix, patch)                       # (B*P, Din)
        emb = (x @ wp + bp).reshape(B, P, HID)                 # (B, P, HID)
        pooled = emb.mean(axis=1)                              # (B, HID)
        hid = jnp.tanh(pooled @ wq + bq)                       # (B, HID)
        return hid @ wv                                        # (B, PROJ)

    z1 = branch(pixel_values1, PATCH1, params["wp1"], params["bp1"],
                params["wq1"], params["bq1"], params["wv1"])
    z2 = branch(pixel_values2, PATCH2, params["wp2"], params["bp2"],
                params["wq2"], params["bq2"], params["wv2"])
    return jnp.concatenate([z1, z2], axis=1)


# ------------------------------ parameter init --------------------------------
def init_params(key):
    ks = jax.random.split(key, 10)

    def dense(k, fan_in, fan_out):
        return (jax.random.normal(k, (fan_in, fan_out), jnp.float32)
                / jnp.sqrt(jnp.float32(fan_in)))

    return {
        # branch 1: Conv2d(C, HID, PATCH1, stride=PATCH1) flattened to (DIN1, HID)
        "wp1": dense(ks[0], DIN1, HID),
        "bp1": 0.01 * jax.random.normal(ks[1], (1, HID), jnp.float32),
        "wq1": dense(ks[2], HID, HID),
        "bq1": 0.01 * jax.random.normal(ks[3], (1, HID), jnp.float32),
        "wv1": dense(ks[4], HID, PROJ),          # Linear(HID, PROJ, bias=False)
        # branch 2
        "wp2": dense(ks[5], DIN2, HID),
        "bp2": 0.01 * jax.random.normal(ks[6], (1, HID), jnp.float32),
        "wq2": dense(ks[7], HID, HID),
        "bq2": 0.01 * jax.random.normal(ks[8], (1, HID), jnp.float32),
        "wv2": dense(ks[9], HID, PROJ),
    }


# ----------------------------------- main -------------------------------------
if __name__ == "__main__":
    key = jax.random.PRNGKey(0)
    k_p, k_x1, k_x2 = jax.random.split(key, 3)

    params = init_params(k_p)
    fused = pack_fused_params(params)   # block-diag packing done once at init
    pixel_values1 = jax.random.normal(k_x1, (B, C, H1, W1), jnp.float32)  # NCHW
    pixel_values2 = jax.random.normal(k_x2, (B, C, H2, W2), jnp.float32)  # NCHW

    out = multiscale_clip_forward(pixel_values1, pixel_values2, fused)
    out = jax.block_until_ready(out)

    ref = _reference(pixel_values1, pixel_values2, params)
    assert out.shape == (B, 2 * PROJ), out.shape
    assert jnp.allclose(out, ref, atol=1e-4, rtol=1e-4), "mismatch vs JAX reference"

    print("KERNEL_OK")
</pallas_src>

<mosaic_0001>
module attributes {stable_mosaic.version = 11 : i64} {
  func.func @_fused_clip_kernel(%arg0: memref<2x1280xf32, #tpu.memory_space<vmem>>, %arg1: memref<1280x64xf32, #tpu.memory_space<vmem>>, %arg2: memref<1x64xf32, #tpu.memory_space<vmem>>, %arg3: memref<64x64xf32, #tpu.memory_space<vmem>>, %arg4: memref<1x64xf32, #tpu.memory_space<vmem>>, %arg5: memref<64x32xf32, #tpu.memory_space<vmem>>, %arg6: memref<2x32xf32, #tpu.memory_space<vmem>>) attributes {dimension_semantics = [], scalar_prefetch = 0 : i64, scratch_operands = 0 : i64, tpu.core_type = #tpu.core_type<tc>} {
    %c0 = arith.constant 0 : index
    %c0_0 = arith.constant 0 : index
    %0 = vector.load %arg0[%c0, %c0_0] : memref<2x1280xf32, #tpu.memory_space<vmem>>, vector<2x1280xf32>
    %c0_1 = arith.constant 0 : index
    %c0_2 = arith.constant 0 : index
    %1 = vector.load %arg1[%c0_1, %c0_2] : memref<1280x64xf32, #tpu.memory_space<vmem>>, vector<1280x64xf32>
    %cst = arith.constant dense<0.000000e+00> : vector<2x64xf32>
    %2 = tpu.matmul %0, %1, %cst {dimension_numbers = #tpu.dot_dimension_numbers<[1], [0], [0], [1], [0, 0, 1, 1], [], []>} : vector<2x1280xf32>, vector<1280x64xf32>, vector<2x64xf32> -> vector<2x64xf32>
    %c0_3 = arith.constant 0 : index
    %c0_4 = arith.constant 0 : index
    %3 = vector.load %arg2[%c0_3, %c0_4] : memref<1x64xf32, #tpu.memory_space<vmem>>, vector<1x64xf32>
    %4 = vector.broadcast %3 : vector<1x64xf32> to vector<2x64xf32>
    %5 = arith.addf %2, %4 : vector<2x64xf32>
    %c0_5 = arith.constant 0 : index
    %c0_6 = arith.constant 0 : index
    %6 = vector.load %arg3[%c0_5, %c0_6] : memref<64x64xf32, #tpu.memory_space<vmem>>, vector<64x64xf32>
    %cst_7 = arith.constant dense<0.000000e+00> : vector<2x64xf32>
    %7 = tpu.matmul %5, %6, %cst_7 {dimension_numbers = #tpu.dot_dimension_numbers<[1], [0], [0], [1], [0, 0, 1, 1], [], []>} : vector<2x64xf32>, vector<64x64xf32>, vector<2x64xf32> -> vector<2x64xf32>
    %c0_8 = arith.constant 0 : index
    %c0_9 = arith.constant 0 : index
    %8 = vector.load %arg4[%c0_8, %c0_9] : memref<1x64xf32, #tpu.memory_space<vmem>>, vector<1x64xf32>
    %9 = vector.broadcast %8 : vector<1x64xf32> to vector<2x64xf32>
    %10 = arith.addf %7, %9 : vector<2x64xf32>
    %11 = math.tanh %10 : vector<2x64xf32>
    %c0_10 = arith.constant 0 : index
    %c0_11 = arith.constant 0 : index
    %12 = vector.load %arg5[%c0_10, %c0_11] : memref<64x32xf32, #tpu.memory_space<vmem>>, vector<64x32xf32>
    %cst_12 = arith.constant dense<0.000000e+00> : vector<2x32xf32>
    %13 = tpu.matmul %11, %12, %cst_12 {dimension_numbers = #tpu.dot_dimension_numbers<[1], [0], [0], [1], [0, 0, 1, 1], [], []>} : vector<2x64xf32>, vector<64x32xf32>, vector<2x32xf32> -> vector<2x32xf32>
    %c0_13 = arith.constant 0 : index
    %c0_14 = arith.constant 0 : index
    %14 = vector.load %arg6[%c0_13, %c0_14] : memref<2x32xf32, #tpu.memory_space<vmem>>, vector<2x32xf32>
    tpu.vector_store %arg6[%c0_13, %c0_14], %13 {strides = array<i32>} : memref<2x32xf32, #tpu.memory_space<vmem>>, vector<2x32xf32>,
    return
  }
}

</mosaic_0001>

<bundles_post_ra>
// kernel: tpu_custom_call.1
= control target key start
LH: loop header
LB: loop body
LE: loop exit
PB: predicated region body
PF: predicated region fallthrough
CT: control target
= control target key end

     0   :  { %s1124_s0 = inlined_call_operand.vmem [shape: f32[2,1280], index: 0, kind: input, shape index: {}]   ;;  %s1125_s1 = inlined_call_operand.vmem [shape: f32[1280,64], index: 1, kind: input, shape index: {}]   ;;  %s1126_s2 = inlined_call_operand.vmem [shape: f32[1,64], index: 2, kind: input, shape index: {}]   ;;  %s1127_s3 = inlined_call_operand.vmem [shape: f32[64,64], index: 3, kind: input, shape index: {}]   ;;  %s1128_s4 = inlined_call_operand.vmem [shape: f32[1,64], index: 4, kind: input, shape index: {}]   ;;  %s1129_s5 = inlined_call_operand.vmem [shape: f32[64,32], index: 5, kind: input, shape index: {}]   ;;  %s1130_s6 = inlined_call_operand.hbm [shape: f32[2,32], index: 6, kind: output, shape index: {}]  }
   0x1   :  { %v42_v0 = vld [vmem:[%s1125_s1 + $0x78] sm:$0xff]  ;;  %v41_v1 = vld [vmem:[%s1125_s1 + $0x70] sm:$0xff]  ;;  %v40_v4 = vld [vmem:[%s1125_s1 + $0x68] sm:$0xff] }
   0x2   :  { %v58_v2 = vld [vmem:[%s1125_s1 + $0xf8] sm:$0xff]  ;;  %218 = vmatpush.msra.mxu0 %v42_v0  ;;  %v57_v3 = vld [vmem:[%s1125_s1 + $0xf0] sm:$0xff]  ;;  %v56_v5 = vld [vmem:[%s1125_s1 + $0xe8] sm:$0xff] }
   0x3   :  { %238 = vmatpush.msra.mxu1 %v58_v2  ;;  %v74_v6 = vld [vmem:[%s1125_s1 + $0x178] sm:$0xff]  ;;  %v73_v7 = vld [vmem:[%s1125_s1 + $0x170] sm:$0xff]  ;;  %v39_v9 = vld [vmem:[%s1125_s1 + $0x60] sm:$0xff] }
   0x4   :  { %219 = vmatpush.msra.mxu0 %v41_v1  ;;  %v90_v8 = vld [vmem:[%s1125_s1 + $0x1f8] sm:$0xff]  ;;  %258 = vmatpush.msra.mxu2 %v74_v6  ;;  %v55_v10 = vld [vmem:[%s1125_s1 + $0xe0] sm:$0xff]  ;;  %v72_v11 = vld [vmem:[%s1125_s1 + $0x168] sm:$0xff] }
   0x5   :  { %239 = vmatpush.msra.mxu1 %v57_v3  ;;  %278 = vmatpush.msra.mxu3 %v90_v8  ;;  %v89_v12 = vld [vmem:[%s1125_s1 + $0x1f0] sm:$0xff]  ;;  %v38_v13 = vld [vmem:[%s1125_s1 + $0x58] sm:$0xff]  ;;  %v88_v15 = vld [vmem:[%s1125_s1 + $0x1e8] sm:$0xff] }
   0x6   :  { %220 = vmatpush.msra.mxu0 %v40_v4  ;;  %259 = vmatpush.msra.mxu2 %v73_v7  ;;  %v54_v14 = vld [vmem:[%s1125_s1 + $0xd8] sm:$0xff]  ;;  %v71_v16 = vld [vmem:[%s1125_s1 + $0x160] sm:$0xff]  ;;  %v37_v18 = vld [vmem:[%s1125_s1 + $0x50] sm:$0xff] }
   0x7   :  { %240 = vmatpush.msra.mxu1 %v56_v5  ;;  %279 = vmatpush.msra.mxu3 %v89_v12  ;;  %v87_v17 = vld [vmem:[%s1125_s1 + $0x1e0] sm:$0xff]  ;;  %v53_v19 = vld [vmem:[%s1125_s1 + $0xd0] sm:$0xff]  ;;  %v70_v20 = vld [vmem:[%s1125_s1 + $0x158] sm:$0xff] }
   0x8   :  { %221 = vmatpush.msra.mxu0 %v39_v9  ;;  %260 = vmatpush.msra.mxu2 %v72_v11  ;;  %v86_v21 = vld [vmem:[%s1125_s1 + $0x1d8] sm:$0xff]  ;;  %v36_v22 = vld [vmem:[%s1125_s1 + $0x48] sm:$0xff]  ;;  %v69_v24 = vld [vmem:[%s1125_s1 + $0x150] sm:$0xff] }
   0x9   :  { %241 = vmatpush.msra.mxu1 %v55_v10  ;;  %280 = vmatpush.msra.mxu3 %v88_v15  ;;  %v52_v23 = vld [vmem:[%s1125_s1 + $0xc8] sm:$0xff]  ;;  %v85_v25 = vld [vmem:[%s1125_s1 + $0x1d0] sm:$0xff]  ;;  %v35_v26 = vld [vmem:[%s1125_s1 + $0x40] sm:$0xff] }
   0xa   :  { %222 = vmatpush.msra.mxu0 %v38_v13  ;;  %261 = vmatpush.msra.mxu2 %v71_v16  ;;  %v51_v27 = vld [vmem:[%s1125_s1 + $0xc0] sm:$0xff]  ;;  %v68_v28 = vld [vmem:[%s1125_s1 + $0x148] sm:$0xff]  ;;  %v34_v30 = vld [vmem:[%s1125_s1 + $0x38] sm:$0xff] }
   0xb   :  { %242 = vmatpush.msra.mxu1 %v54_v14  ;;  %281 = vmatpush.msra.mxu3 %v87_v17  ;;  %v84_v29 = vld [vmem:[%s1125_s1 + $0x1c8] sm:$0xff]  ;;  %v50_v31 = vld [vmem:[%s1125_s1 + $0xb8] sm:$0xff]  ;;  %v67_v32 = vld [vmem:[%s1125_s1 + $0x140] sm:$0xff] }
   0xc   :  { %223 = vmatpush.msra.mxu0 %v37_v18  ;;  %262 = vmatpush.msra.mxu2 %v70_v20  ;;  %v83_v33 = vld [vmem:[%s1125_s1 + $0x1c0] sm:$0xff]  ;;  %v33_v34 = vld [vmem:[%s1125_s1 + $0x30] sm:$0xff]  ;;  %v66_v36 = vld [vmem:[%s1125_s1 + $0x138] sm:$0xff] }
   0xd   :  { %243 = vmatpush.msra.mxu1 %v53_v19  ;;  %282 = vmatpush.msra.mxu3 %v86_v21  ;;  %v49_v35 = vld [vmem:[%s1125_s1 + $0xb0] sm:$0xff]  ;;  %v82_v37 = vld [vmem:[%s1125_s1 + $0x1b8] sm:$0xff]  ;;  %v32_v38 = vld [vmem:[%s1125_s1 + $0x28] sm:$0xff] }
   0xe   :  { %224 = vmatpush.msra.mxu0 %v36_v22  ;;  %263 = vmatpush.msra.mxu2 %v69_v24  ;;  %v48_v39 = vld [vmem:[%s1125_s1 + $0xa8] sm:$0xff]  ;;  %v65_v40 = vld [vmem:[%s1125_s1 + $0x130] sm:$0xff]  ;;  %v31_v42 = vld [vmem:[%s1125_s1 + $0x20] sm:$0xff] }
   0xf   :  { %244 = vmatpush.msra.mxu1 %v52_v23  ;;  %283 = vmatpush.msra.mxu3 %v85_v25  ;;  %v81_v41 = vld [vmem:[%s1125_s1 + $0x1b0] sm:$0xff]  ;;  %v47_v43 = vld [vmem:[%s1125_s1 + $0xa0] sm:$0xff]  ;;  %v64_v44 = vld [vmem:[%s1125_s1 + $0x128] sm:$0xff] }
  0x10   :  { %225 = vmatpush.msra.mxu0 %v35_v26  ;;  %264 = vmatpush.msra.mxu2 %v68_v28  ;;  %v80_v45 = vld [vmem:[%s1125_s1 + $0x1a8] sm:$0xff]  ;;  %v30_v46 = vld [vmem:[%s1125_s1 + $0x18] sm:$0xff]  ;;  %v63_v48 = vld [vmem:[%s1125_s1 + $0x120] sm:$0xff] }
  0x11   :  { %245 = vmatpush.msra.mxu1 %v51_v27  ;;  %284 = vmatpush.msra.mxu3 %v84_v29  ;;  %v46_v47 = vld [vmem:[%s1125_s1 + $0x98] sm:$0xff]  ;;  %v79_v49 = vld [vmem:[%s1125_s1 + $0x1a0] sm:$0xff]  ;;  %v29_v50 = vld [vmem:[%s1125_s1 + $0x10] sm:$0xff] }
  0x12   :  { %226 = vmatpush.msra.mxu0 %v34_v30  ;;  %265 = vmatpush.msra.mxu2 %v67_v32  ;;  %v45_v51 = vld [vmem:[%s1125_s1 + $0x90] sm:$0xff]  ;;  %v62_v52 = vld [vmem:[%s1125_s1 + $0x118] sm:$0xff]  ;;  %v28_v54 = vld [vmem:[%s1125_s1 + $0x8] sm:$0xff] }
  0x13   :  { %246 = vmatpush.msra.mxu1 %v50_v31  ;;  %285 = vmatpush.msra.mxu3 %v83_v33  ;;  %v78_v53 = vld [vmem:[%s1125_s1 + $0x198] sm:$0xff]  ;;  %v44_v55 = vld [vmem:[%s1125_s1 + $0x88] sm:$0xff]  ;;  %v61_v56 = vld [vmem:[%s1125_s1 + $0x110] sm:$0xff] }
  0x14   :  { %227 = vmatpush.msra.mxu0 %v33_v34  ;;  %266 = vmatpush.msra.mxu2 %v66_v36  ;;  %v77_v57 = vld [vmem:[%s1125_s1 + $0x190] sm:$0xff]  ;;  %v27_v58 = vld [vmem:[%s1125_s1] sm:$0xff]  ;;  %v106_v60 = vld [vmem:[%s1125_s1 + $0x278] sm:$0xff] }
  0x15   :  { %247 = vmatpush.msra.mxu1 %v49_v35  ;;  %286 = vmatpush.msra.mxu3 %v82_v37  ;;  %v43_v59 = vld [vmem:[%s1125_s1 + $0x80] sm:$0xff]  ;;  %v122_v61 = vld [vmem:[%s1125_s1 + $0x2f8] sm:$0xff]  ;;  %v60_v62 = vld [vmem:[%s1125_s1 + $0x108] sm:$0xff] }
  0x16   :  { %228 = vmatpush.msra.mxu0 %v32_v38  ;;  %267 = vmatpush.msra.mxu2 %v65_v40  ;;  %v76_v63 = vld [vmem:[%s1125_s1 + $0x188] sm:$0xff]  ;;  %v105_v0 = vld [vmem:[%s1125_s1 + $0x270] sm:$0xff]  ;;  %v59_v2 = vld [vmem:[%s1125_s1 + $0x100] sm:$0xff] }
  0x17   :  { %248 = vmatpush.msra.mxu1 %v48_v39  ;;  %287 = vmatpush.msra.mxu3 %v81_v41  ;;  %v121_v1 = vld [vmem:[%s1125_s1 + $0x2f0] sm:$0xff]  ;;  %v75_v3 = vld [vmem:[%s1125_s1 + $0x180] sm:$0xff]  ;;  %v104_v4 = vld [vmem:[%s1125_s1 + $0x268] sm:$0xff] }
  0x18   :  { %229 = vmatpush.msra.mxu0 %v31_v42  ;;  %268 = vmatpush.msra.mxu2 %v64_v44  ;;  %v120_v5 = vld [vmem:[%s1125_s1 + $0x2e8] sm:$0xff]  ;;  %v138_v6 = vld [vmem:[%s1125_s1 + $0x378] sm:$0xff]  ;;  %v103_v8 = vld [vmem:[%s1125_s1 + $0x260] sm:$0xff] }
  0x19   :  { %249 = vmatpush.msra.mxu1 %v47_v43  ;;  %288 = vmatpush.msra.mxu3 %v80_v45  ;;  %v154_v7 = vld [vmem:[%s1125_s1 + $0x3f8] sm:$0xff]  ;;  %v119_v9 = vld [vmem:[%s1125_s1 + $0x2e0] sm:$0xff]  ;;  %v137_v10 = vld [vmem:[%s1125_s1 + $0x370] sm:$0xff] }
  0x1a   :  { %230 = vmatpush.msra.mxu0 %v30_v46  ;;  %269 = vmatpush.msra.mxu2 %v63_v48  ;;  %v153_v11 = vld [vmem:[%s1125_s1 + $0x3f0] sm:$0xff]  ;;  %v102_v12 = vld [vmem:[%s1125_s1 + $0x258] sm:$0xff]  ;;  %v136_v14 = vld [vmem:[%s1125_s1 + $0x368] sm:$0xff] }
  0x1b   :  { %250 = vmatpush.msra.mxu1 %v46_v47  ;;  %289 = vmatpush.msra.mxu3 %v79_v49  ;;  %v118_v13 = vld [vmem:[%s1125_s1 + $0x2d8] sm:$0xff]  ;;  %v152_v15 = vld [vmem:[%s1125_s1 + $0x3e8] sm:$0xff]  ;;  %v24_v16 = vld [vmem:[%s1124_s0] sm:$0xff] }
  0x1c   :  { %231 = vmatpush.msra.mxu0 %v29_v50  ;;  %270 = vmatpush.msra.mxu2 %v62_v52  ;;  %v101_v17 = vld [vmem:[%s1125_s1 + $0x250] sm:$0xff]  ;;  %194 = vst [vmem:[#allocation1] ss:$4 sm:$0xff] %v24_v16  ;;  %v135_v19 = vld [vmem:[%s1125_s1 + $0x360] sm:$0xff]  ;;  %v100_v21 = vld [vmem:[%s1125_s1 + $0x248] sm:$0xff] }
  0x1d   :  { %251 = vmatpush.msra.mxu1 %v45_v51  ;;  %290 = vmatpush.msra.mxu3 %v78_v53  ;;  %v117_v18 = vld [vmem:[%s1125_s1 + $0x2d0] sm:$0xff]  ;;  %v151_v20 = vld [vmem:[%s1125_s1 + $0x3e0] sm:$0xff]  ;;  %v116_v22 = vld [vmem:[%s1125_s1 + $0x2c8] sm:$0xff] }
  0x1e   :  { %232 = vmatpush.msra.mxu0 %v28_v54  ;;  %271 = vmatpush.msra.mxu2 %v61_v56  ;;  %v99_v23 = vld [vmem:[%s1125_s1 + $0x240] sm:$0xff]  ;;  %v134_v24 = vld [vmem:[%s1125_s1 + $0x358] sm:$0xff]  ;;  %v133_v28 = vld [vmem:[%s1125_s1 + $0x350] sm:$0xff] }
  0x1f   :  { %252 = vmatpush.msra.mxu1 %v44_v55  ;;  %291 = vmatpush.msra.mxu3 %v77_v57  ;;  %v150_v25 = vld [vmem:[%s1125_s1 + $0x3d8] sm:$0xff]  ;;  %v115_v27 = vld [vmem:[%s1125_s1 + $0x2c0] sm:$0xff]  ;;  %v132_v30 = vld [vmem:[%s1125_s1 + $0x348] sm:$0xff] }
  0x20   :  { %233 = vmatpush.msra.mxu0 %v27_v58  ;;  %272 = vmatpush.msra.mxu2 %v60_v62  ;;  %v98_v26 = vld [vmem:[%s1125_s1 + $0x238] sm:$0xff]  ;;  %v149_v31 = vld [vmem:[%s1125_s1 + $0x3d0] sm:$0xff]  ;;  %v25_v32 = vld [vmem:[%s1124_s0 + $0x8] sm:$0xff] }
  0x21   :  { %253 = vmatpush.msra.mxu1 %v43_v59  ;;  %292 = vmatpush.msra.mxu3 %v76_v63  ;;  %v114_v29 = vld [vmem:[%s1125_s1 + $0x2b8] sm:$0xff]  ;;  %v97_v33 = vld [vmem:[%s1125_s1 + $0x230] sm:$0xff]  ;;  %v148_v35 = vld [vmem:[%s1125_s1 + $0x3c8] sm:$0xff]  ;;  %196 = vst [vmem:[#allocation1 + $0x20] ss:$4 sm:$0xff] %v25_v32 }
  0x22   :  { %298 = vmatpush.msrb.mxu0 %v106_v60  ;;  %273 = vmatpush.msra.mxu2 %v59_v2  ;;  %v113_v34 = vld [vmem:[%s1125_s1 + $0x2b0] sm:$0xff]  ;;  %v131_v41 = vld [vmem:[%s1125_s1 + $0x340] sm:$0xff]  ;;  %v96_v43 = vld [vmem:[%s1125_s1 + $0x228] sm:$0xff] }
  0x23   :  { %318 = vmatpush.msrb.mxu1 %v122_v61  ;;  %293 = vmatpush.msra.mxu3 %v75_v3  ;;  %v26_v36 = vld [vmem:[%s1124_s0 + $0x10] sm:$0xf]  ;;  %v197_v38 = vld.sshfl [vmem:[#allocation1] sm:$0xff pattern:$0x73625140]  ;;  %v112_v44 = vld [vmem:[%s1125_s1 + $0x2a8] sm:$0xff] }
  0x24   :  { %299 = vmatpush.msrb.mxu0 %v105_v0  ;;  %338 = vmatpush.msrb.mxu2 %v138_v6  ;;  %v199_v37 = vld.sshfl [vmem:[#allocation1 + $0x10] sm:$0xff pattern:$0x73625140]  ;;  %v200_v39 = vld.sshfl [vmem:[#allocation1 + $0x18] sm:$0xff pattern:$0x73625140] }
  0x25   :  { %319 = vmatpush.msrb.mxu1 %v121_v1  ;;  %358 = vmatpush.msrb.mxu3 %v154_v7  ;;  %v876_v40 = vld.sshfl [vmem:[#allocation1 + $0x8] sm:$0xff pattern:$0x73625140]  ;;  %v147_v42 = vld [vmem:[%s1125_s1 + $0x3c0] sm:$0xff]  ;;  %v130_v45 = vld [vmem:[%s1125_s1 + $0x338] sm:$0xff] }
  0x26   :  { %300 = vmatpush.msrb.mxu0 %v104_v4  ;;  %339 = vmatpush.msrb.mxu2 %v137_v10  ;;  %205 = vst [vmem:[#allocation1] ss:$4 sm:$0xff] %v26_v36  ;;  %v146_v46 = vld [vmem:[%s1125_s1 + $0x3b8] sm:$0xff]  ;;  %v95_v47 = vld [vmem:[%s1125_s1 + $0x220] sm:$0xff]  ;;  %v129_v49 = vld [vmem:[%s1125_s1 + $0x330] sm:$0xff] }
  0x27   :  { %320 = vmatpush.msrb.mxu1 %v120_v5  ;;  %359 = vmatpush.msrb.mxu3 %v153_v11  ;;  %v111_v48 = vld [vmem:[%s1125_s1 + $0x2a0] sm:$0xff]  ;;  %v145_v50 = vld [vmem:[%s1125_s1 + $0x3b0] sm:$0xff]  ;;  %v94_v51 = vld [vmem:[%s1125_s1 + $0x218] sm:$0xff] }
  0x28   :  { %301 = vmatpush.msrb.mxu0 %v103_v8  ;;  %340 = vmatpush.msrb.mxu2 %v136_v14  ;;  %v110_v52 = vld [vmem:[%s1125_s1 + $0x298] sm:$0xff]  ;;  %v93_v53 = vld [vmem:[%s1125_s1 + $0x210] sm:$0xff]  ;;  %v128_v54 = vld [vmem:[%s1125_s1 + $0x328] sm:$0xff] }
  0x29   :  { %321 = vmatpush.msrb.mxu1 %v119_v9  ;;  %360 = vmatpush.msrb.mxu3 %v152_v15  ;;  %v144_v55 = vld [vmem:[%s1125_s1 + $0x3a8] sm:$0xff]  ;;  %v109_v56 = vld [vmem:[%s1125_s1 + $0x290] sm:$0xff]  ;;  %v127_v57 = vld [vmem:[%s1125_s1 + $0x320] sm:$0xff] }
  0x2a   :  { %302 = vmatpush.msrb.mxu0 %v102_v12  ;;  %341 = vmatpush.msrb.mxu2 %v135_v19  ;;  %v143_v58 = vld [vmem:[%s1125_s1 + $0x3a0] sm:$0xff] }
  0x2b   :  { %322 = vmatpush.msrb.mxu1 %v118_v13  ;;  %361 = vmatpush.msrb.mxu3 %v151_v20 }
  0x2c   :  { %303 = vmatpush.msrb.mxu0 %v101_v17  ;;  %342 = vmatpush.msrb.mxu2 %v134_v24 }
  0x2d   :  { %323 = vmatpush.msrb.mxu1 %v117_v18  ;;  %362 = vmatpush.msrb.mxu3 %v150_v25 }
  0x2e   :  { %304 = vmatpush.msrb.mxu0 %v100_v21  ;;  %343 = vmatpush.msrb.mxu2 %v133_v28 }
  0x2f   :  { %324 = vmatpush.msrb.mxu1 %v116_v22  ;;  %363 = vmatpush.msrb.mxu3 %v149_v31 }
  0x30   :  { %305 = vmatpush.msrb.mxu0 %v99_v23  ;;  %344 = vmatpush.msrb.mxu2 %v132_v30 }
  0x31   :  { %325 = vmatpush.msrb.mxu1 %v115_v27  ;;  %364 = vmatpush.msrb.mxu3 %v148_v35 }
  0x32   :  { %306 = vmatpush.msrb.mxu0 %v98_v26  ;;  %345 = vmatpush.msrb.mxu2 %v131_v41 }
  0x33   :  { %326 = vmatpush.msrb.mxu1 %v114_v29  ;;  %365 = vmatpush.msrb.mxu3 %v147_v42 }
  0x34   :  { %307 = vmatpush.msrb.mxu0 %v97_v33  ;;  %346 = vmatpush.msrb.mxu2 %v130_v45 }
  0x35   :  { %327 = vmatpush.msrb.mxu1 %v113_v34  ;;  %366 = vmatpush.msrb.mxu3 %v146_v46 }
  0x36   :  { %308 = vmatpush.msrb.mxu0 %v96_v43  ;;  %347 = vmatpush.msrb.mxu2 %v129_v49 }
  0x37   :  { %328 = vmatpush.msrb.mxu1 %v112_v44  ;;  %367 = vmatpush.msrb.mxu3 %v145_v50 }
  0x38   :  { %309 = vmatpush.msrb.mxu0 %v95_v47 }
  0x39   :  { %329 = vmatpush.msrb.mxu1 %v111_v48 }
  0x3a   :  { %310 = vmatpush.msrb.mxu0 %v94_v51 }
  0x3b   :  { %330 = vmatpush.msrb.mxu1 %v110_v52 }
  0x3c   :  { %11 = vsyncpa [#allocation3], 0  ;;  %348 = vmatpush.msrb.mxu2 %v128_v54  ;;  %v92_v59 = vld [vmem:[%s1125_s1 + $0x208] sm:$0xff]  ;;  %368 = vmatpush.msrb.mxu3 %v144_v55  ;;  %v126_v61 = vld [vmem:[%s1125_s1 + $0x318] sm:$0xff]  ;;  %vm430_vm0 = vcmask 523264   ;;  %s537_s12 = smov [#allocation2]  }
  0x3d   :  { %311 = vmatpush.msrb.mxu0 %v93_v53  ;;  %331 = vmatpush.msrb.mxu1 %v109_v56  ;;  %v108_v60 = vld [vmem:[%s1125_s1 + $0x288] sm:$0xff]  ;;  %v91_v62 = vld [vmem:[%s1125_s1 + $0x200] sm:$0xff]  ;;  %v170_v0 = vld [vmem:[%s1125_s1 + $0x478] sm:$0xff]  ;;  %s493_s13 = sshll.u32 %s537_s12, 4  ;;  %s495_s16 = sshll.u32 %s1130_s6, 4  ;;  %vm486_vm1 = vcmask 254976   ;;  %s494_s13 = int_to_ptr.vmem [resolvable:$true] %s493_s13  ;;  %s496_s16 = int_to_ptr.hbm [resolvable:$true] %s495_s16 }
  0x3e   :  { %349 = vmatpush.msrb.mxu2 %v127_v57  ;;  %369 = vmatpush.msrb.mxu3 %v143_v58  ;;  %v107_v63 = vld [vmem:[%s1125_s1 + $0x280] sm:$0xff]  ;;  %v125_v1 = vld [vmem:[%s1125_s1 + $0x310] sm:$0xff]  ;;  %v142_v2 = vld [vmem:[%s1125_s1 + $0x398] sm:$0xff] }
  0x3f   :  { %312 = vmatpush.msrb.mxu0 %v92_v59  ;;  %274 = vmatmul.f32.vlgmr.msra.gmra.mxu2 %v199_v37  ;;  %v169_v3 = vld [vmem:[%s1125_s1 + $0x470] sm:$0xff]  ;;  %v186_v4 = vld [vmem:[%s1125_s1 + $0x4f8] sm:$0xff]  ;;  %v124_v5 = vld [vmem:[%s1125_s1 + $0x308] sm:$0xff] }
  0x40   :  { %332 = vmatpush.msrb.mxu1 %v108_v60  ;;  %350 = vmatpush.msrb.mxu2 %v126_v61  ;;  %v141_v6 = vld [vmem:[%s1125_s1 + $0x390] sm:$0xff]  ;;  %v168_v7 = vld [vmem:[%s1125_s1 + $0x468] sm:$0xff]  ;;  %v123_v9 = vld [vmem:[%s1125_s1 + $0x300] sm:$0xff] }
  0x41   :  { %313 = vmatpush.msrb.mxu0 %v91_v62  ;;  %294 = vmatmul.f32.vlgmr.msra.gmra.mxu3 %v200_v39  ;;  %v185_v8 = vld [vmem:[%s1125_s1 + $0x4f0] sm:$0xff]  ;;  %v140_v10 = vld [vmem:[%s1125_s1 + $0x388] sm:$0xff]  ;;  %v167_v12 = vld [vmem:[%s1125_s1 + $0x460] sm:$0xff] }
  0x42   :  { %234 = vmatmul.f32.vlgmr.msra.gmra.mxu0 %v197_v38  ;;  %333 = vmatpush.msrb.mxu1 %v107_v63  ;;  %v203_v11 = vld.sshfl [vmem:[#allocation1 + $0x30] sm:$0xff pattern:$0x73625140]  ;;  %v184_v13 = vld [vmem:[%s1125_s1 + $0x4e8] sm:$0xff]  ;;  %v139_v14 = vld [vmem:[%s1125_s1 + $0x380] sm:$0xff] }
  0x43   :  { %378 = vmatpush.msra.mxu0 %v170_v0  ;;  %351 = vmatpush.msrb.mxu2 %v125_v1  ;;  %v201_v15 = vld.sshfl [vmem:[#allocation1 + $0x20] sm:$0xff pattern:$0x73625140]  ;;  %v204_v16 = vld.sshfl [vmem:[#allocation1 + $0x38] sm:$0xff pattern:$0x73625140] }
  0x44   :  { %370 = vmatpush.msrb.mxu3 %v142_v2  ;;  %254 = vmatmul.f32.vlgmr.msra.gmra.mxu1 %v876_v40  ;;  %v166_v17 = vld [vmem:[%s1125_s1 + $0x458] sm:$0xff]  ;;  %v183_v18 = vld [vmem:[%s1125_s1 + $0x4e0] sm:$0xff]  ;;  %v202_v19 = vld.sshfl [vmem:[#allocation1 + $0x28] sm:$0xff pattern:$0x73625140] }
  0x45   :  { %379 = vmatpush.msra.mxu0 %v169_v3  ;;  %398 = vmatpush.msra.mxu1 %v186_v4  ;;  %v165_v20 = vld [vmem:[%s1125_s1 + $0x450] sm:$0xff]  ;;  %v182_v21 = vld [vmem:[%s1125_s1 + $0x4d8] sm:$0xff]  ;;  %v164_v22 = vld [vmem:[%s1125_s1 + $0x448] sm:$0xff] }
  0x46   :  { %352 = vmatpush.msrb.mxu2 %v124_v5  ;;  %371 = vmatpush.msrb.mxu3 %v141_v6  ;;  %v181_v23 = vld [vmem:[%s1125_s1 + $0x4d0] sm:$0xff]  ;;  %v163_v24 = vld [vmem:[%s1125_s1 + $0x440] sm:$0xff]  ;;  %v180_v25 = vld [vmem:[%s1125_s1 + $0x4c8] sm:$0xff] }
  0x47   :  { %380 = vmatpush.msra.mxu0 %v168_v7  ;;  %399 = vmatpush.msra.mxu1 %v185_v8  ;;  %v162_v26 = vld [vmem:[%s1125_s1 + $0x438] sm:$0xff]  ;;  %v179_v27 = vld [vmem:[%s1125_s1 + $0x4c0] sm:$0xff]  ;;  %v161_v28 = vld [vmem:[%s1125_s1 + $0x430] sm:$0xff] }
  0x48   :  { %353 = vmatpush.msrb.mxu2 %v123_v9  ;;  %372 = vmatpush.msrb.mxu3 %v140_v10  ;;  %v178_v29 = vld [vmem:[%s1125_s1 + $0x4b8] sm:$0xff]  ;;  %v160_v30 = vld [vmem:[%s1125_s1 + $0x428] sm:$0xff]  ;;  %v177_v31 = vld [vmem:[%s1125_s1 + $0x4b0] sm:$0xff] }
  0x49   :  { %354 = vmatmul.f32.vlgmr.msrb.gmra.mxu2 %v203_v11  ;;  %381 = vmatpush.msra.mxu0 %v167_v12  ;;  %v159_v32 = vld [vmem:[%s1125_s1 + $0x420] sm:$0xff]  ;;  %v176_v33 = vld [vmem:[%s1125_s1 + $0x4a8] sm:$0xff]  ;;  %v158_v34 = vld [vmem:[%s1125_s1 + $0x418] sm:$0xff] }
  0x4a   :  { %400 = vmatpush.msra.mxu1 %v184_v13  ;;  %373 = vmatpush.msrb.mxu3 %v139_v14  ;;  %v175_v35 = vld [vmem:[%s1125_s1 + $0x4a0] sm:$0xff]  ;;  %v157_v36 = vld [vmem:[%s1125_s1 + $0x410] sm:$0xff]  ;;  %v174_v37 = vld [vmem:[%s1125_s1 + $0x498] sm:$0xff] }
  0x4b   :  { %314 = vmatmul.f32.vlgmr.msrb.gmra.mxu0 %v201_v15  ;;  %374 = vmatmul.f32.vlgmr.msrb.gmra.mxu3 %v204_v16  ;;  %v156_v38 = vld [vmem:[%s1125_s1 + $0x408] sm:$0xff]  ;;  %v173_v39 = vld [vmem:[%s1125_s1 + $0x490] sm:$0xff]  ;;  %v155_v40 = vld [vmem:[%s1125_s1 + $0x400] sm:$0xff] }
  0x4c   :  { %382 = vmatpush.msra.mxu0 %v166_v17  ;;  %401 = vmatpush.msra.mxu1 %v183_v18  ;;  %v172_v41 = vld [vmem:[%s1125_s1 + $0x488] sm:$0xff]  ;;  %v206_v42 = vld.sshfl [vmem:[#allocation1] sm:$0xff pattern:$0x73625140]  ;;  %v425_v45 = vld [vmem:[%s1127_s3 + $0x38] sm:$0xff] }
  0x4d   :  { %334 = vmatmul.f32.vlgmr.msrb.gmra.mxu1 %v202_v19  ;;  %v171_v43 = vld [vmem:[%s1125_s1 + $0x480] sm:$0xff]  ;;  %v207_v44 = vld.sshfl [vmem:[#allocation1 + $0x8] sm:$0xff pattern:$0x73625140]  ;;  %v424_v46 = vld [vmem:[%s1127_s3 + $0x30] sm:$0xff]  ;;  %442 = vmatpush.msra.mxu2 %v425_v45 }
  0x4e   :  { %383 = vmatpush.msra.mxu0 %v165_v20  ;;  %402 = vmatpush.msra.mxu1 %v182_v21  ;;  %v423_v47 = vld [vmem:[%s1127_s3 + $0x28] sm:$0xff]  ;;  %v422_v48 = vld [vmem:[%s1127_s3 + $0x20] sm:$0xff]  ;;  %v421_v49 = vld [vmem:[%s1127_s3 + $0x18] sm:$0xff] }
  0x4f   :  { %443 = vmatpush.msra.mxu2 %v424_v46  ;;  %v507_v50 = vld [vmem:[%s1126_s2] ss:$0 sm:$0xff]  ;;  %v420_v51 = vld [vmem:[%s1127_s3 + $0x10] sm:$0xff]  ;;  %v419_v53 = vld [vmem:[%s1127_s3 + $0x8] sm:$0xff] }
  0x50   :  { %384 = vmatpush.msra.mxu0 %v164_v22  ;;  %403 = vmatpush.msra.mxu1 %v181_v23  ;;  %v418_v55 = vld [vmem:[%s1127_s3] sm:$0xff]  ;;  %v462_v57 = vld [vmem:[%s1129_s5 + $0x38] sm:$0xff]  ;;  %v461_v58 = vld [vmem:[%s1129_s5 + $0x30] sm:$0xff] }
  0x51   :  { %444 = vmatpush.msra.mxu2 %v423_v47  ;;  %474 = vmatpush.msra.mxu3 %v462_v57  ;;  %v460_v60 = vld [vmem:[%s1129_s5 + $0x28] sm:$0xff]  ;;  %v459_v13 = vld [vmem:[%s1129_s5 + $0x20] sm:$0xff]  ;;  %v458_v14 = vld [vmem:[%s1129_s5 + $0x18] sm:$0xff] }
  0x52   :  { %385 = vmatpush.msra.mxu0 %v163_v24  ;;  %404 = vmatpush.msra.mxu1 %v180_v25  ;;  %v457_v15 = vld [vmem:[%s1129_s5 + $0x10] sm:$0xff]  ;;  %v456_v16 = vld [vmem:[%s1129_s5 + $0x8] sm:$0xff]  ;;  %v455_v17 = vld [vmem:[%s1129_s5] sm:$0xff] }
  0x53   :  { %445 = vmatpush.msra.mxu2 %v422_v48  ;;  %475 = vmatpush.msra.mxu3 %v461_v58  ;;  %v508_v18 = vld [vmem:[%s1128_s4] ss:$0 sm:$0xff] }
  0x54   :  { %386 = vmatpush.msra.mxu0 %v162_v26  ;;  %405 = vmatpush.msra.mxu1 %v179_v27 }
  0x55   :  { %446 = vmatpush.msra.mxu2 %v421_v49  ;;  %476 = vmatpush.msra.mxu3 %v460_v60 }
  0x56   :  { %387 = vmatpush.msra.mxu0 %v161_v28  ;;  %406 = vmatpush.msra.mxu1 %v178_v29 }
  0x57   :  { %447 = vmatpush.msra.mxu2 %v420_v51  ;;  %477 = vmatpush.msra.mxu3 %v459_v13 }
  0x58   :  { %388 = vmatpush.msra.mxu0 %v160_v30  ;;  %407 = vmatpush.msra.mxu1 %v177_v31 }
  0x59   :  { %448 = vmatpush.msra.mxu2 %v419_v53  ;;  %478 = vmatpush.msra.mxu3 %v458_v14 }
  0x5a   :  { %389 = vmatpush.msra.mxu0 %v159_v32  ;;  %408 = vmatpush.msra.mxu1 %v176_v33 }
  0x5b   :  { %449 = vmatpush.msra.mxu2 %v418_v55  ;;  %479 = vmatpush.msra.mxu3 %v457_v15 }
  0x5c   :  { %390 = vmatpush.msra.mxu0 %v158_v34  ;;  %409 = vmatpush.msra.mxu1 %v175_v35 }
  0x5d   :  { %480 = vmatpush.msra.mxu3 %v456_v16 }
  0x5e   :  { %391 = vmatpush.msra.mxu0 %v157_v36  ;;  %410 = vmatpush.msra.mxu1 %v174_v37 }
  0x5f   :  { %481 = vmatpush.msra.mxu3 %v455_v17 }
  0x60   :  { %392 = vmatpush.msra.mxu0 %v156_v38  ;;  %411 = vmatpush.msra.mxu1 %v173_v39 }
  0x62   :  { %393 = vmatpush.msra.mxu0 %v155_v40  ;;  %412 = vmatpush.msra.mxu1 %v172_v41 }
  0x63   :  { %394 = vmatmul.f32.vlgmr.msra.gmra.mxu0 %v206_v42 }
  0x64   :  { %413 = vmatpush.msra.mxu1 %v171_v43 }
  0x65   :  { %414 = vmatmul.f32.vlgmr.msra.gmra.mxu1 %v207_v44 }
  0xbf   :  { %v235_v52 = vpop.f32.mrf.mxu0 }
  0xc0   :  { %v236_v54 = vadd.f32 %v507_v50, %v235_v52 }
  0xc1   :  { %v255_v56 = vpop.f32.mrf.mxu1 }
  0xc2   :  { %v256_v59 = vadd.f32 %v255_v56, %v236_v54  ;;  %v275_v61 = vpop.f32.mrf.mxu2 }
  0xc4   :  { %v276_v62 = vadd.f32 %v275_v61, %v256_v59  ;;  %v295_v63 = vpop.f32.mrf.mxu3 }
  0xc6   :  { %v296_v0 = vadd.f32 %v295_v63, %v276_v62 }
  0xc8   :  { %v315_v1 = vpop.f32.mrf.mxu0 }
  0xc9   :  { %v316_v2 = vadd.f32 %v315_v1, %v296_v0 }
  0xca   :  { %v335_v3 = vpop.f32.mrf.mxu1 }
  0xcb   :  { %v336_v4 = vadd.f32 %v335_v3, %v316_v2 }
  0xcc   :  { %v355_v5 = vpop.f32.mrf.mxu2 }
  0xcd   :  { %v356_v6 = vadd.f32 %v355_v5, %v336_v4 }
  0xce   :  { %v375_v7 = vpop.f32.mrf.mxu3 }
  0xcf   :  { %v376_v8 = vadd.f32 %v375_v7, %v356_v6 }
  0xe0   :  { %v395_v9 = vpop.f32.mrf.mxu0 }
  0xe1   :  { %v396_v10 = vadd.f32 %v395_v9, %v376_v8 }
  0xe2   :  { %v415_v11 = vpop.f32.mrf.mxu1 }
  0xe3   :  { %v416_v12 = vadd.f32 %v415_v11, %v396_v10 }
  0xe5   :  { %504 = vmatmul.msk.f32.vlgmr.msra.gmra.mxu2 %vm430_vm0, %v416_v12 }
 0x168   :  { %v451_v19 = vpop.f32.mrf.mxu2 }
 0x169   :  { %v452_v20 = vadd.f32 %v508_v18, %v451_v19 }
 0x16b   :  { %509 = vtanh.f32 %v452_v20 }
 0x171   :  { %v510_v21 = vpop.eup %509 }
 0x172   :  { %505 = vmatmul.msk.f32.vlgmr.msra.gmra.mxu3 %vm430_vm0, %v510_v21 }
 0x1f5   :  { %v483_v22 = vpop.f32.mrf.mxu3 }
 0x1f6   :  { %487 = vst.msk [vmem:[#allocation2] sm:$0x3] %vm486_vm1, %v483_v22 }
 0x1f7   :  { %498 = dma.vmem_to_hbm [thread:$0]  %s494_s13, 32, %s496_s16, [#allocation3]  }
 0x1f8   :  { %535 = dma.done.wait [#allocation3], 32  }
 0x1f9   :  { %536 = vsyncadd [#allocation3], 4294967264 }
 0x1fa   :  { %503 = vsyncpa [#allocation3], 1 }

</bundles_post_ra>
